<compile_context>
chip_gen: v5e
topology: v5e:2x2
jax: 0.10.0
libtpu: 0.0.40
codegen_flags: <defaults>
</compile_context>

<pallas_src>
import jax
import jax.numpy as jnp
from jax.experimental import pallas as pl
from jax.experimental.pallas import tpu as pltpu

# ----------------------------- model config ---------------------------------
C_IN = 4
C_OUT = 8
C_PAD = 128               # lane-dense padded channel / logit count
KH = KW = 3
K_COL = KH * KW * C_IN    # 36  (im2col contraction dim)
N_CLS = 10
EPS = 1e-5


# -------------------- fused conv+BN+ReLU+pool+FC kernel ----------------------
def fused_kernel(xc_ref, w_ref, aff_ref, fcw_ref, o_ref):
    # xc_ref : (N*H*W, 36)   bf16  im2col'ed padded input (whole batch)
    # w_ref  : (36, 128)     bf16  conv weights, Cout zero-padded to 128
    # aff_ref: (3, 128)      f32   row0 = BN scale, row1 = BN shift,
    #                              row2 = fc bias (lane-padded with zeros)
    # fcw_ref: (128, 128)    f32   fc weights / (H*W); rows>=8 and cols>=10 zero
    # o_ref  : (N, 128)      f32   lane-dense logits (cols>=10 are zero)
    n = o_ref.shape[0]
    hw = xc_ref.shape[0] // n
    cp = w_ref.shape[1]

    # One MXU matmul for the whole 3x3 conv (bf16 in, f32 accumulate).
    acc = jnp.dot(xc_ref[...], w_ref[...],
                  preferred_element_type=jnp.float32)          # (N*H*W, 128)

    # Folded eval-mode BatchNorm + ReLU (padded lanes stay exactly 0).
    y = jnp.maximum(acc * aff_ref[0:1, :] + aff_ref[1:2, :], 0.0)

    # Global average pool: sublane split + cross-sublane reduce.
    # The 1/(H*W) factor is pre-folded into fcw_ref.
    pooled = jnp.sum(y.reshape(n, hw, cp), axis=1)             # (N, 128)

    # Final FC (lane-dense output) + bias row.
    o_ref[...] = (
        jnp.dot(pooled, fcw_ref[...], preferred_element_type=jnp.float32)
        + aff_ref[2:3, :]
    )


# ---------------- one-time frozen-parameter preprocessing --------------------
def prepare_params(params, hw):
    """Fold/pad all frozen parameters once (module init), not per forward."""
    (conv_w, conv_b, bn_gamma, bn_beta, bn_mean, bn_var, fc_w, fc_b) = params

    # Conv weights (KH,KW,Cin,Cout) -> (36, Cout) -> zero-pad Cout to 128, bf16.
    w_col = conv_w.reshape(K_COL, C_OUT)
    w_col = jnp.pad(w_col, ((0, 0), (0, C_PAD - C_OUT))).astype(jnp.bfloat16)

    # Eval-mode BatchNorm folded into per-channel affine (conv bias folded in).
    inv_std = 1.0 / jnp.sqrt(bn_var + EPS)
    scale = jnp.pad(bn_gamma * inv_std, (0, C_PAD - C_OUT))
    shift = jnp.pad(bn_beta + bn_gamma * inv_std * (conv_b - bn_mean),
                    (0, C_PAD - C_OUT))
    fcb = jnp.pad(fc_b, (0, C_PAD - N_CLS))
    affine = jnp.stack([scale, shift, fcb]).astype(jnp.float32)      # (3, 128)

    # FC weights: fold 1/(H*W) pooling scale, zero-pad rows 8->128 and
    # cols 10->128 (lane-dense output).  Padded rows/cols are exactly zero.
    fcw = jnp.pad(fc_w / float(hw),
                  ((0, C_PAD - C_OUT), (0, C_PAD - N_CLS))).astype(jnp.float32)

    return w_col, affine, fcw


# ------------------------------- forward -------------------------------------
@jax.jit
def source_forward(x_nchw, w_col, affine, fcw):
    """Forward pass of Source(model).  x_nchw: (N, C, H, W) float32."""
    N, C, H, W = x_nchw.shape
    assert C == C_IN

    # NCHW -> NHWC, spatial pad=1, im2col, bf16 cast (all fused by XLA under jit).
    # Note: im2col expands the HBM input ~9x; acceptable at this size, and the
    # bf16 cast halves it back.  For large N*H*W, move the taps in-kernel.
    x = jnp.transpose(x_nchw, (0, 2, 3, 1)).astype(jnp.float32)
    x_pad = jnp.pad(x, ((0, 0), (1, 1), (1, 1), (0, 0)))
    cols = [x_pad[:, kh:kh + H, kw:kw + W, :]
            for kh in range(KH) for kw in range(KW)]
    x_cols = (jnp.concatenate(cols, axis=-1)
              .reshape(N * H * W, K_COL)
              .astype(jnp.bfloat16))

    out = pl.pallas_call(
        fused_kernel,
        out_shape=jax.ShapeDtypeStruct((N, C_PAD), jnp.float32),
        grid_spec=pltpu.PrefetchScalarGridSpec(
            num_scalar_prefetch=0,
            grid=(1,),
            in_specs=[
                pl.BlockSpec((N * H * W, K_COL), lambda i: (0, 0)),
                pl.BlockSpec((K_COL, C_PAD), lambda i: (0, 0)),
                pl.BlockSpec((3, C_PAD), lambda i: (0, 0)),
                pl.BlockSpec((C_PAD, C_PAD), lambda i: (0, 0)),
            ],
            out_specs=pl.BlockSpec((N, C_PAD), lambda i: (0, 0)),
        ),
        compiler_params=pltpu.CompilerParams(
            dimension_semantics=("arbitrary",),
            vmem_limit_bytes=32 * 1024 * 1024,
        ),
    )(x_cols, w_col, affine, fcw)

    return out[:, :N_CLS]


# --------------------------- pure-JAX f32 reference --------------------------
def reference_forward(x_nchw, params):
    (conv_w, conv_b, bn_gamma, bn_beta, bn_mean, bn_var, fc_w, fc_b) = params
    x = jnp.transpose(x_nchw, (0, 2, 3, 1)).astype(jnp.float32)   # NHWC
    y = jax.lax.conv_general_dilated(
        x, conv_w, window_strides=(1, 1), padding="SAME",
        dimension_numbers=("NHWC", "HWIO", "NHWC"),
        precision=jax.lax.Precision.HIGHEST,
    ) + conv_b
    y = bn_gamma * (y - bn_mean) / jnp.sqrt(bn_var + EPS) + bn_beta
    y = jnp.maximum(y, 0.0)
    pooled = jnp.mean(y, axis=(1, 2))
    return jnp.dot(pooled, fc_w, precision=jax.lax.Precision.HIGHEST) + fc_b


# ----------------------------------- main ------------------------------------
if __name__ == "__main__":
    key = jax.random.PRNGKey(0)
    keys = jax.random.split(key, 8)

    N, H, W = 2, 16, 16
    x = jax.random.normal(keys[0], (N, C_IN, H, W), dtype=jnp.float32)

    # Deterministic synthetic parameters (eval-mode running stats are frozen).
    conv_w = 0.1 * jax.random.normal(keys[1], (KH, KW, C_IN, C_OUT), jnp.float32)
    conv_b = 0.05 * jax.random.normal(keys[2], (C_OUT,), jnp.float32)
    bn_gamma = 1.0 + 0.1 * jax.random.normal(keys[3], (C_OUT,), jnp.float32)
    bn_beta = 0.1 * jax.random.normal(keys[4], (C_OUT,), jnp.float32)
    bn_mean = 0.05 * jax.random.normal(keys[5], (C_OUT,), jnp.float32)
    bn_var = 0.5 + jax.nn.softplus(jax.random.normal(keys[6], (C_OUT,), jnp.float32))
    fc_w = 0.1 * jax.random.normal(keys[7], (C_OUT, N_CLS), jnp.float32)
    fc_b = jnp.zeros((N_CLS,), jnp.float32)

    params = (conv_w, conv_b, bn_gamma, bn_beta, bn_mean, bn_var, fc_w, fc_b)

    # One-time parameter folding (hoisted out of the per-call forward path).
    w_col, affine, fcw = prepare_params(params, H * W)
    w_col, affine, fcw = jax.block_until_ready((w_col, affine, fcw))

    out = source_forward(x, w_col, affine, fcw)
    out = jax.block_until_ready(out)

    ref = reference_forward(x, params)
    assert out.shape == (N, N_CLS)
    # Tolerance accounts for bf16 MXU inputs vs a full-f32 (HIGHEST) reference.
    assert jnp.allclose(out, ref, rtol=1e-3, atol=1e-3), "mismatch vs reference"

    print("KERNEL_OK")
</pallas_src>

<mosaic_0001>
module attributes {stable_mosaic.version = 11 : i64} {
  func.func @fused_kernel(%arg0: i32, %arg1: memref<512x36xbf16, #tpu.memory_space<vmem>>, %arg2: memref<36x128xbf16, #tpu.memory_space<vmem>>, %arg3: memref<3x128xf32, #tpu.memory_space<vmem>>, %arg4: memref<128x128xf32, #tpu.memory_space<vmem>>, %arg5: memref<2x128xf32, #tpu.memory_space<vmem>>) attributes {dimension_semantics = [#tpu.dimension_semantics<arbitrary>], iteration_bounds = array<i64: 1>, scalar_prefetch = 0 : i64, scratch_operands = 0 : i64, tpu.core_type = #tpu.core_type<tc>, window_params = [{pipeline_mode = #tpu.pipeline_mode<synchronous>, transform_indices = @transform_0, window_bounds = array<i64: 512, 36>}, {pipeline_mode = #tpu.pipeline_mode<synchronous>, transform_indices = @transform_1, window_bounds = array<i64: 36, 128>}, {pipeline_mode = #tpu.pipeline_mode<synchronous>, transform_indices = @transform_2, window_bounds = array<i64: 3, 128>}, {pipeline_mode = #tpu.pipeline_mode<synchronous>, transform_indices = @transform_3, window_bounds = array<i64: 128, 128>}, {pipeline_mode = #tpu.pipeline_mode<synchronous>, transform_indices = @transform_4, window_bounds = array<i64: 2, 128>}]} {
    %c0 = arith.constant 0 : index
    %c0_0 = arith.constant 0 : index
    %0 = vector.load %arg1[%c0, %c0_0] : memref<512x36xbf16, #tpu.memory_space<vmem>>, vector<512x36xbf16>
    %c0_1 = arith.constant 0 : index
    %c0_2 = arith.constant 0 : index
    %1 = vector.load %arg2[%c0_1, %c0_2] : memref<36x128xbf16, #tpu.memory_space<vmem>>, vector<36x128xbf16>
    %cst = arith.constant dense<0.000000e+00> : vector<512x128xf32>
    %2 = tpu.matmul %0, %1, %cst {dimension_numbers = #tpu.dot_dimension_numbers<[1], [0], [0], [1], [0, 0, 1, 1], [], []>} : vector<512x36xbf16>, vector<36x128xbf16>, vector<512x128xf32> -> vector<512x128xf32>
    %c0_3 = arith.constant 0 : index
    %c0_4 = arith.constant 0 : index
    %3 = vector.load %arg3[%c0_3, %c0_4] : memref<3x128xf32, #tpu.memory_space<vmem>>, vector<1x128xf32>
    %4 = vector.broadcast %3 : vector<1x128xf32> to vector<512x128xf32>
    %5 = arith.mulf %2, %4 : vector<512x128xf32>
    %c1 = arith.constant 1 : index
    %c0_5 = arith.constant 0 : index
    %6 = vector.load %arg3[%c1, %c0_5] : memref<3x128xf32, #tpu.memory_space<vmem>>, vector<1x128xf32>
    %7 = vector.broadcast %6 : vector<1x128xf32> to vector<512x128xf32>
    %8 = arith.addf %5, %7 : vector<512x128xf32>
    %cst_6 = arith.constant 0.000000e+00 : f32
    %9 = vector.broadcast %cst_6 : f32 to vector<512x128xf32>
    %10 = arith.maximumf %8, %9 : vector<512x128xf32>
    %11 = vector.shape_cast %10 : vector<512x128xf32> to vector<2x256x128xf32>
    %cst_7 = arith.constant dense<0.000000e+00> : vector<2x128xf32>
    %12 = vector.multi_reduction <add>, %11, %cst_7 [1] : vector<2x256x128xf32> to vector<2x128xf32>
    %c0_8 = arith.constant 0 : index
    %c0_9 = arith.constant 0 : index
    %13 = vector.load %arg4[%c0_8, %c0_9] : memref<128x128xf32, #tpu.memory_space<vmem>>, vector<128x128xf32>
    %cst_10 = arith.constant dense<0.000000e+00> : vector<2x128xf32>
    %14 = tpu.matmul %12, %13, %cst_10 {dimension_numbers = #tpu.dot_dimension_numbers<[1], [0], [0], [1], [0, 0, 1, 1], [], []>} : vector<2x128xf32>, vector<128x128xf32>, vector<2x128xf32> -> vector<2x128xf32>
    %c2 = arith.constant 2 : index
    %c0_11 = arith.constant 0 : index
    %15 = vector.load %arg3[%c2, %c0_11] : memref<3x128xf32, #tpu.memory_space<vmem>>, vector<1x128xf32>
    %16 = vector.broadcast %15 : vector<1x128xf32> to vector<2x128xf32>
    %17 = arith.addf %14, %16 : vector<2x128xf32>
    %c0_12 = arith.constant 0 : index
    %c0_13 = arith.constant 0 : index
    %18 = vector.load %arg5[%c0_12, %c0_13] : memref<2x128xf32, #tpu.memory_space<vmem>>, vector<2x128xf32>
    tpu.vector_store %arg5[%c0_12, %c0_13], %17 {strides = array<i32>} : memref<2x128xf32, #tpu.memory_space<vmem>>, vector<2x128xf32>,
    return
  }
  func.func @transform_0(%arg0: i32) -> (i32, i32) {
    %c0_i32 = arith.constant 0 : i32
    %c0_i32_0 = arith.constant 0 : i32
    %c0_i32_1 = arith.constant 0 : i32
    return %c0_i32, %c0_i32_0 : i32, i32
  }
  func.func @transform_1(%arg0: i32) -> (i32, i32) {
    %c0_i32 = arith.constant 0 : i32
    %c0_i32_0 = arith.constant 0 : i32
    %c0_i32_1 = arith.constant 0 : i32
    return %c0_i32, %c0_i32_0 : i32, i32
  }
  func.func @transform_2(%arg0: i32) -> (i32, i32) {
    %c0_i32 = arith.constant 0 : i32
    %c0_i32_0 = arith.constant 0 : i32
    %c0_i32_1 = arith.constant 0 : i32
    return %c0_i32, %c0_i32_0 : i32, i32
  }
  func.func @transform_3(%arg0: i32) -> (i32, i32) {
    %c0_i32 = arith.constant 0 : i32
    %c0_i32_0 = arith.constant 0 : i32
    %c0_i32_1 = arith.constant 0 : i32
    return %c0_i32, %c0_i32_0 : i32, i32
  }
  func.func @transform_4(%arg0: i32) -> (i32, i32) {
    %c0_i32 = arith.constant 0 : i32
    %c0_i32_0 = arith.constant 0 : i32
    %c0_i32_1 = arith.constant 0 : i32
    return %c0_i32, %c0_i32_0 : i32, i32
  }
}

</mosaic_0001>

<bundles_post_ra>
// kernel: source_forward.1
= control target key start
LH: loop header
LB: loop body
LE: loop exit
PB: predicated region body
PF: predicated region fallthrough
CT: control target
= control target key end

     0   :  { %vm360_vm0 = vcmask 1041408   ;;  %s1546_s0 = inlined_call_operand.vmem [shape: bf16[512,36], index: 0, kind: input, shape index: {}]   ;;  %s1547_s1 = inlined_call_operand.vmem [shape: bf16[36,128], index: 1, kind: input, shape index: {}]   ;;  %s1548_s2 = inlined_call_operand.vmem [shape: f32[3,128], index: 2, kind: input, shape index: {}]   ;;  %s1549_s3 = inlined_call_operand.vmem [shape: f32[128,128], index: 3, kind: input, shape index: {}]   ;;  %s1550_s4 = inlined_call_operand.hbm [shape: f32[2,128], index: 4, kind: output, shape index: {}]  }
   0x1   :  { %v87_v0 = vld [vmem:[%s1547_s1 + $0x10] sm:$0x3] }
   0x2   :  { %v257_v1 = vunpack.c.l.b16 %v87_v0 }
   0x4   :  { %v260_v2 = vpack.c.b16 %v257_v1, %v257_v1 }
   0x5   :  { %9 = vsyncpa [#allocation3], 0  ;;  %v1064_v4 = vld [vmem:[%s1547_s1 + $0x8] sm:$0xff]  ;;  %v1063_v5 = vld [vmem:[%s1547_s1] sm:$0xff]  ;;  %vm263_vm1 = vcmask 293888   ;;  %vm823_vm2 = vcmask 1041409  }
   0x6   :  { %v362_v3 = vsel %vm360_vm0, %v260_v2, 0  ;;  %v1031_v6 = vld [vmem:[%s1546_s0] sm:$0xff]  ;;  %v1045_v7 = vld [vmem:[%s1546_s0 + $0x70] sm:$0xff]  ;;  %v1054_v8 = vld [vmem:[%s1546_s0 + $0xb8] sm:$0xff]  ;;  %s1104_s12 = smov [#allocation2]   ;;  %s854_s16 = sshll.u32 %s1550_s4, 4  ;;  %s855_s16 = int_to_ptr.hbm [resolvable:$true] %s854_s16 }
   0x7   :  { %369 = vmatpush.bf16.msra.mxu0 %v362_v3  ;;  %1066 = vmatpush.bf16.msra.mxu2 %v362_v3  ;;  %v1032_v9 = vld [vmem:[%s1546_s0 + $0x8] sm:$0xff]  ;;  %v1046_v10 = vld [vmem:[%s1546_s0 + $0x78] sm:$0xff]  ;;  %v1055_v11 = vld [vmem:[%s1546_s0 + $0xc0] sm:$0xff]  ;;  %s852_s13 = sshll.u32 %s1104_s12, 4  ;;  %s853_s13 = int_to_ptr.vmem [resolvable:$true] %s852_s13 }
   0x8   :  { %1067 = vmatpush.bf16.msra.mxu3 %v362_v3  ;;  %1065 = vmatpush.bf16.msra.mxu1 %v362_v3  ;;  %v1033_v12 = vld [vmem:[%s1546_s0 + $0x10] sm:$0xff]  ;;  %v1047_v13 = vld [vmem:[%s1546_s0 + $0x80] sm:$0xff]  ;;  %v1056_v14 = vld [vmem:[%s1546_s0 + $0xc8] sm:$0xff] }
   0x9   :  { %v1034_v15 = vld [vmem:[%s1546_s0 + $0x18] sm:$0xff]  ;;  %v1048_v16 = vld [vmem:[%s1546_s0 + $0x88] sm:$0xff]  ;;  %v1057_v17 = vld [vmem:[%s1546_s0 + $0xd0] sm:$0xff] }
   0xa   :  { %v1040_v18 = vld [vmem:[%s1546_s0 + $0x48] sm:$0xff]  ;;  %v1035_v19 = vld [vmem:[%s1546_s0 + $0x20] sm:$0xff]  ;;  %v1049_v20 = vld [vmem:[%s1546_s0 + $0x90] sm:$0xff] }
   0xb   :  { %370 = vmatpush.bf16.msra.mxu0 %v1064_v4  ;;  %1069 = vmatpush.bf16.msra.mxu2 %v1064_v4  ;;  %v1058_v21 = vld [vmem:[%s1546_s0 + $0xd8] sm:$0xff]  ;;  %v1041_v22 = vld [vmem:[%s1546_s0 + $0x50] sm:$0xff]  ;;  %v1036_v23 = vld [vmem:[%s1546_s0 + $0x28] sm:$0xff] }
   0xc   :  { %1070 = vmatpush.bf16.msra.mxu3 %v1064_v4  ;;  %1068 = vmatpush.bf16.msra.mxu1 %v1064_v4  ;;  %v1050_v24 = vld [vmem:[%s1546_s0 + $0x98] sm:$0xff]  ;;  %v1059_v25 = vld [vmem:[%s1546_s0 + $0xe0] sm:$0xff]  ;;  %v1037_v27 = vld [vmem:[%s1546_s0 + $0x30] sm:$0xff] }
   0xd   :  { %v1042_v26 = vld [vmem:[%s1546_s0 + $0x58] sm:$0xff]  ;;  %v1051_v28 = vld [vmem:[%s1546_s0 + $0xa0] sm:$0xff]  ;;  %v1060_v29 = vld [vmem:[%s1546_s0 + $0xe8] sm:$0xff] }
   0xe   :  { %v1043_v30 = vld [vmem:[%s1546_s0 + $0x60] sm:$0xff]  ;;  %v1038_v31 = vld [vmem:[%s1546_s0 + $0x38] sm:$0xff]  ;;  %v1052_v32 = vld [vmem:[%s1546_s0 + $0xa8] sm:$0xff] }
   0xf   :  { %371 = vmatpush.bf16.msra.mxu0 %v1063_v5  ;;  %1072 = vmatpush.bf16.msra.mxu2 %v1063_v5  ;;  %v1061_v33 = vld [vmem:[%s1546_s0 + $0xf0] sm:$0xff]  ;;  %v1044_v34 = vld [vmem:[%s1546_s0 + $0x68] sm:$0xff]  ;;  %v1039_v35 = vld [vmem:[%s1546_s0 + $0x40] sm:$0xff] }
  0x10   :  { %1073 = vmatpush.bf16.msra.mxu3 %v1063_v5  ;;  %1071 = vmatpush.bf16.msra.mxu1 %v1063_v5  ;;  %v1053_v36 = vld [vmem:[%s1546_s0 + $0xb0] sm:$0xff]  ;;  %v1062_v38 = vld [vmem:[%s1546_s0 + $0xf8] sm:$0xff]  ;;  %v1267_v39 = vld [vmem:[%s1548_s2] ss:$0 sm:$0xff] }
  0x11   :  { %v1276_v41 = vld [vmem:[%s1548_s2 + $0x1] ss:$0 sm:$0xff] }
  0x12   :  { %999 = vmatmul.msk.bf16.vlgmr.msra.gmra.mxu0 %vm263_vm1, %v1031_v6  ;;  %1013 = vmatmul.msk.bf16.vlgmr.msra.gmra.mxu2 %vm263_vm1, %v1045_v7 }
  0x13   :  { %1022 = vmatmul.msk.bf16.vlgmr.msra.gmra.mxu3 %vm263_vm1, %v1054_v8  ;;  %1008 = vmatmul.msk.bf16.vlgmr.msra.gmra.mxu1 %vm263_vm1, %v1040_v18 }
  0x22   :  { %1000 = vmatmul.msk.bf16.gmra.mxu0 %vm263_vm1, %v1032_v9  ;;  %1014 = vmatmul.msk.bf16.gmra.mxu2 %vm263_vm1, %v1046_v10 }
  0x23   :  { %1023 = vmatmul.msk.bf16.gmra.mxu3 %vm263_vm1, %v1055_v11  ;;  %1009 = vmatmul.msk.bf16.gmra.mxu1 %vm263_vm1, %v1041_v22 }
  0x32   :  { %1001 = vmatmul.msk.bf16.gmra.mxu0 %vm263_vm1, %v1033_v12  ;;  %1015 = vmatmul.msk.bf16.gmra.mxu2 %vm263_vm1, %v1047_v13 }
  0x33   :  { %1024 = vmatmul.msk.bf16.gmra.mxu3 %vm263_vm1, %v1056_v14  ;;  %1010 = vmatmul.msk.bf16.gmra.mxu1 %vm263_vm1, %v1042_v26 }
  0x42   :  { %1002 = vmatmul.msk.bf16.gmra.mxu0 %vm263_vm1, %v1034_v15  ;;  %1016 = vmatmul.msk.bf16.gmra.mxu2 %vm263_vm1, %v1048_v16 }
  0x43   :  { %1025 = vmatmul.msk.bf16.gmra.mxu3 %vm263_vm1, %v1057_v17  ;;  %1011 = vmatmul.msk.bf16.gmra.mxu1 %vm263_vm1, %v1043_v30 }
  0x52   :  { %1003 = vmatmul.msk.bf16.gmra.mxu0 %vm263_vm1, %v1035_v19  ;;  %1017 = vmatmul.msk.bf16.gmra.mxu2 %vm263_vm1, %v1049_v20 }
  0x53   :  { %1026 = vmatmul.msk.bf16.gmra.mxu3 %vm263_vm1, %v1058_v21  ;;  %1012 = vmatmul.msk.bf16.gmra.mxu1 %vm263_vm1, %v1044_v34 }
  0x62   :  { %1004 = vmatmul.msk.bf16.gmra.mxu0 %vm263_vm1, %v1036_v23  ;;  %1018 = vmatmul.msk.bf16.gmra.mxu2 %vm263_vm1, %v1050_v24 }
  0x63   :  { %1027 = vmatmul.msk.bf16.gmra.mxu3 %vm263_vm1, %v1059_v25 }
  0x72   :  { %1005 = vmatmul.msk.bf16.gmra.mxu0 %vm263_vm1, %v1037_v27  ;;  %1019 = vmatmul.msk.bf16.gmra.mxu2 %vm263_vm1, %v1051_v28 }
  0x73   :  { %1028 = vmatmul.msk.bf16.gmra.mxu3 %vm263_vm1, %v1060_v29 }
  0x82   :  { %1006 = vmatmul.msk.bf16.gmra.mxu0 %vm263_vm1, %v1038_v31  ;;  %1020 = vmatmul.msk.bf16.gmra.mxu2 %vm263_vm1, %v1052_v32 }
  0x83   :  { %1029 = vmatmul.msk.bf16.gmra.mxu3 %vm263_vm1, %v1061_v33 }
  0x8f   :  { %v373_v37 = vpop.f32.mrf.mxu0 }
  0x90   :  { %v535_v40 = vmul.f32 %v1267_v39, %v373_v37  ;;  %v1317_v33 = vpop.f32.mrf.mxu1 }
  0x92   :  { %1007 = vmatmul.msk.bf16.gmra.mxu0 %vm263_vm1, %v1039_v35  ;;  %1021 = vmatmul.msk.bf16.gmra.mxu2 %vm263_vm1, %v1053_v36  ;;  %v601_v43 = vadd.f32 %v1276_v41, %v535_v40 }
  0x93   :  { %1030 = vmatmul.msk.bf16.gmra.mxu3 %vm263_vm1, %v1062_v38 }
  0x94   :  { %v665_v47 = vmax.f32 %v601_v43, 0.0 }
  0x95   :  { %v1278_v42 = vpop.f32.mrf.mxu2 }
  0x96   :  { %v1281_v44 = vpop.f32.mrf.mxu3 }
  0x97   :  { %v375_v45 = vpop.f32.mrf.mxu0 }
  0x98   :  { %v536_v46 = vmul.f32 %v1267_v39, %v375_v45  ;;  %v1323_v40 = vpop.f32.mrf.mxu1 }
  0x9a   :  { %v602_v48 = vadd.f32 %v1276_v41, %v536_v46 }
  0x9c   :  { %v666_v49 = vmax.f32 %v602_v48, 0.0 }
  0x9d   :  { %v1285_v50 = vpop.f32.mrf.mxu2 }
  0x9e   :  { %v729_v51 = vadd.f32 %v666_v49, %v665_v47  ;;  %v1287_v52 = vpop.f32.mrf.mxu3 }
  0x9f   :  { %v378_v53 = vpop.f32.mrf.mxu0 }
  0xa0   :  { %v537_v54 = vmul.f32 %v1267_v39, %v378_v53  ;;  %v1327_v48 = vpop.f32.mrf.mxu1 }
  0xa2   :  { %v603_v55 = vadd.f32 %v1276_v41, %v537_v54 }
  0xa4   :  { %v667_v56 = vmax.f32 %v603_v55, 0.0 }
  0xa5   :  { %v1291_v57 = vpop.f32.mrf.mxu2 }
  0xa6   :  { %v730_v58 = vadd.f32 %v729_v51, %v667_v56  ;;  %v1293_v59 = vpop.f32.mrf.mxu3 }
  0xa7   :  { %v380_v60 = vpop.f32.mrf.mxu0 }
  0xa8   :  { %v538_v61 = vmul.f32 %v1267_v39, %v380_v60  ;;  %v1331_v55 = vpop.f32.mrf.mxu1  ;;  %v818_v60 = vld [vmem:[%s1549_s3 + $0x78] sm:$0xff] }
  0xa9   :  { %826 = vmatpush.msrb.mxu1 %v818_v60 }
  0xaa   :  { %v604_v62 = vadd.f32 %v1276_v41, %v538_v61  ;;  %v817_v61 = vld [vmem:[%s1549_s3 + $0x70] sm:$0xff] }
  0xab   :  { %827 = vmatpush.msrb.mxu1 %v817_v61 }
  0xac   :  { %v668_v63 = vmax.f32 %v604_v62, 0.0 }
  0xad   :  { %v1297_v0 = vpop.f32.mrf.mxu2 }
  0xae   :  { %v731_v1 = vadd.f32 %v730_v58, %v668_v63  ;;  %v1299_v3 = vpop.f32.mrf.mxu3 }
  0xaf   :  { %v383_v2 = vpop.f32.mrf.mxu0 }
  0xb0   :  { %v539_v4 = vmul.f32 %v1267_v39, %v383_v2  ;;  %v1341_v63 = vpop.f32.mrf.mxu1 }
  0xb2   :  { %v605_v5 = vadd.f32 %v1276_v41, %v539_v4  ;;  %v816_v4 = vld [vmem:[%s1549_s3 + $0x68] sm:$0xff] }
  0xb3   :  { %828 = vmatpush.msrb.mxu1 %v816_v4 }
  0xb4   :  { %v669_v6 = vmax.f32 %v605_v5, 0.0 }
  0xb5   :  { %v453_v7 = vpop.f32.mrf.mxu2 }
  0xb6   :  { %v732_v8 = vadd.f32 %v731_v1, %v669_v6  ;;  %v1304_v11 = vpop.f32.mrf.mxu3  ;;  %v567_v12 = vmul.f32 %v1267_v39, %v453_v7  ;;  %v815_v7 = vld [vmem:[%s1549_s3 + $0x60] sm:$0xff] }
  0xb7   :  { %v385_v9 = vpop.f32.mrf.mxu0  ;;  %829 = vmatpush.msrb.mxu1 %v815_v7 }
  0xb8   :  { %v540_v10 = vmul.f32 %v1267_v39, %v385_v9  ;;  %v633_v16 = vadd.f32 %v1276_v41, %v567_v12  ;;  %v1348_v6 = vpop.f32.mrf.mxu1 }
  0xba   :  { %v606_v13 = vadd.f32 %v1276_v41, %v540_v10  ;;  %v697_v22 = vmax.f32 %v633_v16, 0.0 }
  0xbc   :  { %v670_v14 = vmax.f32 %v606_v13, 0.0 }
  0xbd   :  { %v455_v15 = vpop.f32.mrf.mxu2 }
  0xbe   :  { %v733_v17 = vadd.f32 %v732_v8, %v670_v14  ;;  %v568_v18 = vmul.f32 %v1267_v39, %v455_v15  ;;  %v1313_v25 = vpop.f32.mrf.mxu3 }
  0xbf   :  { %v388_v19 = vpop.f32.mrf.mxu0 }
  0xc0   :  { %v634_v20 = vadd.f32 %v1276_v41, %v568_v18  ;;  %v541_v21 = vmul.f32 %v1267_v39, %v388_v19 }
  0xc2   :  { %v698_v23 = vmax.f32 %v634_v20, 0.0  ;;  %v607_v24 = vadd.f32 %v1276_v41, %v541_v21  ;;  %v1363_v21 = vpop.f32.mrf.mxu1 }
  0xc4   :  { %v766_v26 = vadd.f32 %v698_v23, %v697_v22  ;;  %v671_v27 = vmax.f32 %v607_v24, 0.0 }
  0xc5   :  { %v458_v28 = vpop.f32.mrf.mxu2 }
  0xc6   :  { %v734_v29 = vadd.f32 %v733_v17, %v671_v27  ;;  %v569_v30 = vmul.f32 %v1267_v39, %v458_v28  ;;  %v1321_v37 = vpop.f32.mrf.mxu3 }
  0xc7   :  { %v390_v31 = vpop.f32.mrf.mxu0 }
  0xc8   :  { %v635_v32 = vadd.f32 %v1276_v41, %v569_v30  ;;  %v542_v9 = vmul.f32 %v1267_v39, %v390_v31 }
  0xca   :  { %v699_v34 = vmax.f32 %v635_v32, 0.0  ;;  %v608_v14 = vadd.f32 %v1276_v41, %v542_v9 }
  0xcc   :  { %v1319_v35 = vadd.f32 %v766_v26, %v699_v34  ;;  %v672_v22 = vmax.f32 %v608_v14, 0.0 }
  0xcd   :  { %v460_v36 = vpop.f32.mrf.mxu2 }
  0xce   :  { %v1325_v46 = vpop.f32.mrf.mxu3  ;;  %v570_v16 = vmul.f32 %v1267_v39, %v460_v36 }
  0xcf   :  { %v393_v38 = vpop.f32.mrf.mxu0 }
  0xd0   :  { %v543_v13 = vmul.f32 %v1267_v39, %v393_v38  ;;  %v636_v26 = vadd.f32 %v1276_v41, %v570_v16 }
  0xd2   :  { %v609_v17 = vadd.f32 %v1276_v41, %v543_v13  ;;  %v700_v60 = vmax.f32 %v636_v26, 0.0 }
  0xd4   :  { %v673_v30 = vmax.f32 %v609_v17, 0.0 }
  0xd5   :  { %v463_v43 = vpop.f32.mrf.mxu2 }
  0xd6   :  { %v1329_v51 = vpop.f32.mrf.mxu3  ;;  %v571_v19 = vmul.f32 %v1267_v39, %v463_v43  ;;  %v735_v43 = vadd.f32 %v734_v29, %v672_v22 }
  0xd7   :  { %v395_v45 = vpop.f32.mrf.mxu0 }
  0xd8   :  { %v544_v15 = vmul.f32 %v1267_v39, %v395_v45  ;;  %v637_v34 = vadd.f32 %v1276_v41, %v571_v19  ;;  %v736_v4 = vadd.f32 %v735_v43, %v673_v30  ;;  %v813_v43 = vld [vmem:[%s1549_s3 + $0x50] sm:$0xff] }
  0xda   :  { %v610_v23 = vadd.f32 %v1276_v41, %v544_v15 }
  0xdc   :  { %v674_v45 = vmax.f32 %v610_v23, 0.0 }
  0xdd   :  { %v465_v47 = vpop.f32.mrf.mxu2 }
  0xde   :  { %v1333_v56 = vpop.f32.mrf.mxu3  ;;  %v572_v27 = vmul.f32 %v1267_v39, %v465_v47  ;;  %v737_v15 = vadd.f32 %v736_v4, %v674_v45 }
  0xdf   :  { %v398_v49 = vpop.f32.mrf.mxu0 }
  0xe0   :  { %v545_v18 = vmul.f32 %v1267_v39, %v398_v49  ;;  %v638_v47 = vadd.f32 %v1276_v41, %v572_v27 }
  0xe2   :  { %v611_v31 = vadd.f32 %v1276_v41, %v545_v18  ;;  %v768_v18 = vadd.f32 %v1319_v35, %v700_v60  ;;  %v702_v19 = vmax.f32 %v638_v47, 0.0 }
  0xe4   :  { %v675_v7 = vmax.f32 %v611_v31, 0.0 }
  0xe5   :  { %v468_v53 = vpop.f32.mrf.mxu2 }
  0xe6   :  { %v1343_v2 = vpop.f32.mrf.mxu3  ;;  %v573_v36 = vmul.f32 %v1267_v39, %v468_v53  ;;  %v701_v53 = vmax.f32 %v637_v34, 0.0 }
  0xe7   :  { %v400_v54 = vpop.f32.mrf.mxu0 }
  0xe8   :  { %v546_v24 = vmul.f32 %v1267_v39, %v400_v54  ;;  %v639_v13 = vadd.f32 %v1276_v41, %v573_v36  ;;  %v769_v30 = vadd.f32 %v768_v18, %v701_v53 }
  0xea   :  { %v612_v49 = vadd.f32 %v1276_v41, %v546_v24  ;;  %v738_v24 = vadd.f32 %v737_v15, %v675_v7  ;;  %v703_v31 = vmax.f32 %v639_v13, 0.0  ;;  %v770_v45 = vadd.f32 %v769_v30, %v702_v19 }
  0xec   :  { %v676_v16 = vmax.f32 %v612_v49, 0.0 }
  0xed   :  { %v470_v58 = vpop.f32.mrf.mxu2 }
  0xee   :  { %v1354_v12 = vpop.f32.mrf.mxu3  ;;  %v574_v61 = vmul.f32 %v1267_v39, %v470_v58  ;;  %v814_v58 = vld [vmem:[%s1549_s3 + $0x58] sm:$0xff]  ;;  %v739_v35 = vadd.f32 %v738_v24, %v676_v16  ;;  %v555_v24 = vmul.f32 %v1267_v39, %v1327_v48  ;;  %v582_v48 = vmul.f32 %v1267_v39, %v1287_v52 }
  0xef   :  { %v403_v62 = vpop.f32.mrf.mxu0  ;;  %830 = vmatpush.msrb.mxu1 %v814_v58 }
  0xf0   :  { %v547_v32 = vmul.f32 %v1267_v39, %v403_v62 }
  0xf1   :  { %831 = vmatpush.msrb.mxu1 %v813_v43 }
  0xf2   :  { %v613_v62 = vadd.f32 %v1276_v41, %v547_v32 }
  0xf4   :  { %v677_v26 = vmax.f32 %v613_v62, 0.0  ;;  %v771_v62 = vadd.f32 %v770_v45, %v703_v31 }
  0xf5   :  { %v473_v1 = vpop.f32.mrf.mxu2 }
  0xf6   :  { %v1373_v38 = vpop.f32.mrf.mxu3  ;;  %v575_v29 = vmul.f32 %v1267_v39, %v473_v1  ;;  %v1391_v1 = vpop.f32.mrf.mxu1  ;;  %v740_v47 = vadd.f32 %v739_v35, %v677_v26  ;;  %v556_v35 = vmul.f32 %v1267_v39, %v1331_v55 }
  0xf7   :  { %v405_v5 = vpop.f32.mrf.mxu0 }
  0xf8   :  { %v548_v54 = vmul.f32 %v1267_v39, %v405_v5  ;;  %v641_v32 = vadd.f32 %v1276_v41, %v575_v29  ;;  %v622_v52 = vadd.f32 %v1276_v41, %v556_v35 }
  0xfa   :  { %v614_v5 = vadd.f32 %v1276_v41, %v548_v54 }
  0xfc   :  { %v678_v34 = vmax.f32 %v614_v5, 0.0  ;;  %v581_v5 = vmul.f32 %v1267_v39, %v1281_v44 }
  0xfd   :  { %v475_v8 = vpop.f32.mrf.mxu2 }
  0xfe   :  { %v576_v22 = vmul.f32 %v1267_v39, %v475_v8  ;;  %v1402_v60 = vpop.f32.mrf.mxu3  ;;  %v741_v13 = vadd.f32 %v740_v47, %v678_v34  ;;  %v647_v31 = vadd.f32 %v1276_v41, %v581_v5  ;;  %v584_v5 = vmul.f32 %v1267_v39, %v1299_v3 }
  0xff   :  { %v408_v10 = vpop.f32.mrf.mxu0 }
 0x100   :  { %v549_v9 = vmul.f32 %v1267_v39, %v408_v10  ;;  %v640_v10 = vadd.f32 %v1276_v41, %v574_v61  ;;  %v642_v54 = vadd.f32 %v1276_v41, %v576_v22 }
 0x102   :  { %v615_v27 = vadd.f32 %v1276_v41, %v549_v9  ;;  %v704_v49 = vmax.f32 %v640_v10, 0.0  ;;  %v705_v9 = vmax.f32 %v641_v32, 0.0  ;;  %v706_v58 = vmax.f32 %v642_v54, 0.0 }
 0x103   :  { %v557_v54 = vmul.f32 %v1267_v39, %v1341_v63 }
 0x104   :  { %v679_v61 = vmax.f32 %v615_v27, 0.0  ;;  %v438_v27 = vpop.f32.mrf.mxu1 }
 0x105   :  { %v478_v20 = vpop.f32.mrf.mxu2 }
 0x106   :  { %v577_v36 = vmul.f32 %v1267_v39, %v478_v20  ;;  %v553_v20 = vmul.f32 %v1267_v39, %v1317_v33  ;;  %v742_v19 = vadd.f32 %v741_v13, %v679_v61  ;;  %v1430_v61 = vpop.f32.mrf.mxu3 }
 0x107   :  { %v410_v28 = vpop.f32.mrf.mxu0 }
 0x108   :  { %v550_v17 = vmul.f32 %v1267_v39, %v410_v28  ;;  %v643_v29 = vadd.f32 %v1276_v41, %v577_v36 }
 0x10a   :  { %v616_v8 = vadd.f32 %v1276_v41, %v550_v17  ;;  %v772_v17 = vadd.f32 %v771_v62, %v704_v49  ;;  %v707_v44 = vmax.f32 %v643_v29, 0.0  ;;  %v621_v49 = vadd.f32 %v1276_v41, %v555_v24 }
 0x10b   :  { %v711_v62 = vmax.f32 %v647_v31, 0.0  ;;  %v586_v31 = vmul.f32 %v1267_v39, %v1313_v25 }
 0x10c   :  { %v680_v15 = vmax.f32 %v616_v8, 0.0  ;;  %v773_v26 = vadd.f32 %v772_v17, %v705_v9  ;;  %v583_v9 = vmul.f32 %v1267_v39, %v1293_v59  ;;  %v623_v17 = vadd.f32 %v1276_v41, %v557_v54 }
 0x10d   :  { %v480_v14 = vpop.f32.mrf.mxu2  ;;  %v559_v59 = vmul.f32 %v1267_v39, %v1363_v21  ;;  %v560_v21 = vmul.f32 %v1267_v39, %v1391_v1 }
 0x10e   :  { %v578_v4 = vmul.f32 %v1267_v39, %v480_v14  ;;  %v554_v14 = vmul.f32 %v1267_v39, %v1323_v40  ;;  %v774_v34 = vadd.f32 %v773_v26, %v706_v58  ;;  %v1472_v25 = vpop.f32.mrf.mxu3 }
 0x10f   :  { %v413_v23 = vpop.f32.mrf.mxu0  ;;  %v625_v1 = vadd.f32 %v1276_v41, %v559_v59 }
 0x110   :  { %v551_v28 = vmul.f32 %v1267_v39, %v413_v23  ;;  %v644_v33 = vadd.f32 %v1276_v41, %v578_v4  ;;  %v619_v23 = vadd.f32 %v1276_v41, %v553_v20  ;;  %v620_v32 = vadd.f32 %v1276_v41, %v554_v14 }
 0x111   :  { %v775_v4 = vadd.f32 %v774_v34, %v707_v44  ;;  %v685_v14 = vmax.f32 %v621_v49, 0.0  ;;  %v561_v44 = vmul.f32 %v1267_v39, %v438_v27  ;;  %v626_v49 = vadd.f32 %v1276_v41, %v560_v21 }
 0x112   :  { %v617_v7 = vadd.f32 %v1276_v41, %v551_v28  ;;  %v743_v28 = vadd.f32 %v742_v19, %v680_v15  ;;  %v708_v36 = vmax.f32 %v644_v33, 0.0  ;;  %v683_v45 = vmax.f32 %v619_v23, 0.0  ;;  %v440_v23 = vpop.f32.mrf.mxu1 }
 0x113   :  { %v684_v13 = vmax.f32 %v620_v32, 0.0  ;;  %v649_v33 = vadd.f32 %v1276_v41, %v583_v9  ;;  %v687_v32 = vmax.f32 %v623_v17, 0.0  ;;  %v562_v34 = vmul.f32 %v1267_v39, %v440_v23 }
 0x114   :  { %v681_v10 = vmax.f32 %v617_v7, 0.0  ;;  %v776_v29 = vadd.f32 %v775_v4, %v708_v36  ;;  %v809_v36 = vld [vmem:[%s1549_s3 + $0x30] sm:$0xff]  ;;  %v627_v4 = vadd.f32 %v1276_v41, %v561_v44 }
 0x115   :  { %v483_v53 = vpop.f32.mrf.mxu2 }
 0x116   :  { %v579_v16 = vmul.f32 %v1267_v39, %v483_v53  ;;  %v744_v8 = vadd.f32 %v743_v28, %v681_v10  ;;  %v558_v53 = vmul.f32 %v1267_v39, %v1348_v6  ;;  %v812_v6 = vld [vmem:[%s1549_s3 + $0x48] sm:$0xff]  ;;  %v585_v10 = vmul.f32 %v1267_v39, %v1304_v11  ;;  %v811_v28 = vld [vmem:[%s1549_s3 + $0x40] sm:$0xff]  ;;  %v810_v11 = vld [vmem:[%s1549_s3 + $0x38] sm:$0xff] }
 0x117   :  { %v415_v18 = vpop.f32.mrf.mxu0  ;;  %832 = vmatpush.msrb.mxu1 %v812_v6 }
 0x118   :  { %v552_v22 = vmul.f32 %v1267_v39, %v415_v18  ;;  %v645_v40 = vadd.f32 %v1276_v41, %v579_v16  ;;  %v648_v16 = vadd.f32 %v1276_v41, %v582_v48  ;;  %v624_v3 = vadd.f32 %v1276_v41, %v558_v53 }
 0x119   :  { %833 = vmatpush.msrb.mxu1 %v811_v28  ;;  %v587_v48 = vmul.f32 %v1267_v39, %v1321_v37  ;;  %v689_v37 = vmax.f32 %v625_v1, 0.0  ;;  %v628_v53 = vadd.f32 %v1276_v41, %v562_v34 }
 0x11a   :  { %v618_v30 = vadd.f32 %v1276_v41, %v552_v22  ;;  %v709_v7 = vmax.f32 %v645_v40, 0.0  ;;  %v686_v22 = vmax.f32 %v622_v52, 0.0  ;;  %v712_v40 = vmax.f32 %v648_v16, 0.0 }
 0x11b   :  { %834 = vmatpush.msrb.mxu1 %v810_v11  ;;  %v592_v11 = vmul.f32 %v1267_v39, %v1354_v12  ;;  %v803_v12 = vld [vmem:[%s1549_s3] sm:$0xff] }
 0x11c   :  { %v682_v43 = vmax.f32 %v618_v30, 0.0  ;;  %v777_v58 = vadd.f32 %v776_v29, %v709_v7  ;;  %v650_v30 = vadd.f32 %v1276_v41, %v584_v5  ;;  %v563_v7 = vmul.f32 %v1267_v39, %v1278_v42 }
 0x11d   :  { %v485_v47 = vpop.f32.mrf.mxu2  ;;  %835 = vmatpush.msrb.mxu1 %v809_v36  ;;  %v589_v42 = vmul.f32 %v1267_v39, %v1329_v51  ;;  %v807_v51 = vld [vmem:[%s1549_s3 + $0x20] sm:$0xff]  ;;  %v593_v36 = vmul.f32 %v1267_v39, %v1373_v38  ;;  %v595_v38 = vmul.f32 %v1267_v39, %v1430_v61 }
 0x11e   :  { %v745_v20 = vadd.f32 %v744_v8, %v682_v43  ;;  %v580_v55 = vmul.f32 %v1267_v39, %v485_v47  ;;  %v713_v8 = vmax.f32 %v649_v33, 0.0  ;;  %v651_v43 = vadd.f32 %v1276_v41, %v585_v10  ;;  %v806_v10 = vld [vmem:[%s1549_s3 + $0x18] sm:$0xff] }
 0x11f   :  { %v629_v17 = vadd.f32 %v1276_v41, %v563_v7  ;;  %v692_v33 = vmax.f32 %v628_v53, 0.0 }
 0x120   :  { %v746_v63 = vadd.f32 %v745_v20, %v683_v45  ;;  %v646_v15 = vadd.f32 %v1276_v41, %v580_v55  ;;  %v688_v45 = vmax.f32 %v624_v3, 0.0  ;;  %v714_v20 = vmax.f32 %v650_v30, 0.0 }
 0x121   :  { %v652_v55 = vadd.f32 %v1276_v41, %v586_v31  ;;  %v715_v29 = vmax.f32 %v651_v43, 0.0  ;;  %v591_v3 = vmul.f32 %v1267_v39, %v1343_v2  ;;  %v693_v44 = vmax.f32 %v629_v17, 0.0  ;;  %v804_v2 = vld [vmem:[%s1549_s3 + $0x8] sm:$0xff] }
 0x122   :  { %v747_v18 = vadd.f32 %v746_v63, %v684_v13  ;;  %v710_v19 = vmax.f32 %v646_v15, 0.0  ;;  %v564_v13 = vmul.f32 %v1267_v39, %v1285_v50  ;;  %v653_v63 = vadd.f32 %v1276_v41, %v587_v48  ;;  %v808_v15 = vld [vmem:[%s1549_s3 + $0x28] sm:$0xff] }
 0x123   :  { %836 = vmatpush.msrb.mxu1 %v808_v15  ;;  %v565_v50 = vmul.f32 %v1267_v39, %v1291_v57  ;;  %v716_v59 = vmax.f32 %v652_v55, 0.0  ;;  %v659_v55 = vadd.f32 %v1276_v41, %v593_v36 }
 0x124   :  { %v748_v24 = vadd.f32 %v747_v18, %v685_v14  ;;  %v778_v26 = vadd.f32 %v777_v58, %v710_v19  ;;  %v691_v14 = vmax.f32 %v627_v4, 0.0  ;;  %v590_v18 = vmul.f32 %v1267_v39, %v1333_v56  ;;  %v805_v56 = vld [vmem:[%s1549_s3 + $0x10] sm:$0xff] }
 0x125   :  { %837 = vmatpush.msrb.mxu1 %v807_v51  ;;  %v630_v57 = vadd.f32 %v1276_v41, %v564_v13  ;;  %v717_v23 = vmax.f32 %v653_v63, 0.0  ;;  %v631_v28 = vadd.f32 %v1276_v41, %v565_v50  ;;  %v596_v13 = vmul.f32 %v1267_v39, %v1472_v25 }
 0x126   :  { %v749_v35 = vadd.f32 %v748_v24, %v686_v22  ;;  %v779_v27 = vadd.f32 %v778_v26, %v711_v62  ;;  %v588_v62 = vmul.f32 %v1267_v39, %v1325_v46  ;;  %v690_v46 = vmax.f32 %v626_v49, 0.0 }
 0x127   :  { %v566_v22 = vmul.f32 %v1267_v39, %v1297_v0  ;;  %v655_v24 = vadd.f32 %v1276_v41, %v589_v42  ;;  %838 = vmatpush.msrb.mxu1 %v806_v10  ;;  %v528_v0 = vpop.f32.mrf.mxu3  ;;  %v656_v30 = vadd.f32 %v1276_v41, %v590_v18  ;;  %v694_v1 = vmax.f32 %v630_v57, 0.0 }
 0x128   :  { %v750_v54 = vadd.f32 %v749_v35, %v687_v32  ;;  %v780_v47 = vadd.f32 %v779_v27, %v712_v40  ;;  %v654_v58 = vadd.f32 %v1276_v41, %v588_v62  ;;  %v657_v27 = vadd.f32 %v1276_v41, %v591_v3 }
 0x129   :  { %839 = vmatpush.msrb.mxu1 %v805_v56  ;;  %v632_v35 = vadd.f32 %v1276_v41, %v566_v22  ;;  %v719_v34 = vmax.f32 %v655_v24, 0.0  ;;  %v695_v48 = vmax.f32 %v631_v28, 0.0  ;;  %v720_v49 = vmax.f32 %v656_v30, 0.0 }
 0x12a   :  { %v751_v9 = vadd.f32 %v750_v54, %v688_v45  ;;  %v781_v52 = vadd.f32 %v780_v47, %v713_v8  ;;  %v718_v40 = vmax.f32 %v654_v58, 0.0  ;;  %v658_v45 = vadd.f32 %v1276_v41, %v592_v11 }
 0x12b   :  { %840 = vmatpush.msrb.mxu1 %v804_v2  ;;  %v594_v54 = vmul.f32 %v1267_v39, %v1402_v60  ;;  %v696_v7 = vmax.f32 %v632_v35, 0.0  ;;  %v723_v63 = vmax.f32 %v659_v55, 0.0  ;;  %v661_v42 = vadd.f32 %v1276_v41, %v595_v38 }
 0x12c   :  { %v752_v16 = vadd.f32 %v751_v9, %v689_v37  ;;  %v782_v5 = vadd.f32 %v781_v52, %v714_v20  ;;  %v721_v20 = vmax.f32 %v657_v27, 0.0  ;;  %v722_v9 = vmax.f32 %v658_v45, 0.0 }
 0x12d   :  { %841 = vmatpush.msrb.mxu1 %v803_v12  ;;  %v660_v52 = vadd.f32 %v1276_v41, %v594_v54  ;;  %v662_v61 = vadd.f32 %v1276_v41, %v596_v13  ;;  %v725_v17 = vmax.f32 %v661_v42, 0.0 }
 0x12e   :  { %v753_v19 = vadd.f32 %v752_v16, %v690_v46  ;;  %v783_v6 = vadd.f32 %v782_v5, %v715_v29  ;;  %v597_v46 = vmul.f32 %v1267_v39, %v528_v0 }
 0x12f   :  { %v530_v29 = vpop.f32.mrf.mxu3  ;;  %v724_v16 = vmax.f32 %v660_v52, 0.0  ;;  %v726_v51 = vmax.f32 %v662_v61, 0.0 }
 0x130   :  { %v784_v21 = vadd.f32 %v783_v6, %v716_v59  ;;  %v754_v26 = vadd.f32 %v753_v19, %v691_v14  ;;  %v598_v14 = vmul.f32 %v1267_v39, %v530_v29  ;;  %v663_v59 = vadd.f32 %v1276_v41, %v597_v46 }
 0x132   :  { %v785_v31 = vadd.f32 %v784_v21, %v717_v23  ;;  %v755_v32 = vadd.f32 %v754_v26, %v692_v33  ;;  %v664_v18 = vadd.f32 %v1276_v41, %v598_v14  ;;  %v727_v6 = vmax.f32 %v663_v59, 0.0  ;;  %v1077_v41 = vld [vmem:[%s1548_s2 + $0x2] ss:$0 sm:$0xff] }
 0x134   :  { %v786_v8 = vadd.f32 %v785_v31, %v718_v40  ;;  %v756_v43 = vadd.f32 %v755_v32, %v693_v44  ;;  %v728_v57 = vmax.f32 %v664_v18, 0.0 }
 0x136   :  { %v787_v47 = vadd.f32 %v786_v8, %v719_v34  ;;  %v757_v4 = vadd.f32 %v756_v43, %v694_v1 }
 0x138   :  { %v788_v62 = vadd.f32 %v787_v47, %v720_v49  ;;  %v758_v37 = vadd.f32 %v757_v4, %v695_v48 }
 0x13a   :  { %v789_v53 = vadd.f32 %v788_v62, %v721_v20  ;;  %v759_v60 = vadd.f32 %v758_v37, %v696_v7 }
 0x13c   :  { %v790_v15 = vadd.f32 %v789_v53, %v722_v9  ;;  %v760_v58 = vrot.slane %v759_v60, 4 }
 0x13e   :  { %v791_v5 = vadd.f32 %v790_v15, %v723_v63  ;;  %v761_v33 = vadd.f32 %v760_v58, %v759_v60 }
 0x140   :  { %v792_v50 = vadd.f32 %v791_v5, %v724_v16  ;;  %v762_v3 = vrot.slane %v761_v33, 2 }
 0x142   :  { %v793_v25 = vadd.f32 %v792_v50, %v725_v17  ;;  %v763_v24 = vadd.f32 %v762_v3, %v761_v33 }
 0x144   :  { %v794_v19 = vadd.f32 %v793_v25, %v726_v51  ;;  %v764_v21 = vrot.slane %v763_v24, 1 }
 0x146   :  { %v795_v10 = vadd.f32 %v794_v19, %v727_v6  ;;  %v765_v28 = vadd.f32 %v764_v21, %v763_v24 }
 0x148   :  { %v796_v22 = vadd.f32 %v795_v10, %v728_v57 }
 0x14a   :  { %v797_v56 = vrot.slane %v796_v22, 4 }
 0x14c   :  { %v798_v23 = vadd.f32 %v797_v56, %v796_v22 }
 0x14e   :  { %v799_v39 = vrot.slane %v798_v23, 2 }
 0x150   :  { %v800_v26 = vadd.f32 %v799_v39, %v798_v23 }
 0x152   :  { %v801_v44 = vrot.slane %v800_v26, 1 }
 0x154   :  { %v802_v11 = vadd.f32 %v801_v44, %v800_v26 }
 0x156   :  { %v824_v0 = vsel %vm823_vm2, %v802_v11, %v765_v28 }
 0x157   :  { %842 = vmatmul.f32.vlgmr.msrb.gmra.mxu1 %v824_v0 }
 0x1d4   :  { %v843_v2 = vpop.f32.mrf.mxu1 }
 0x1d5   :  { %v844_v40 = vadd.f32 %v1077_v41, %v843_v2 }
 0x1d7   :  { %846 = vst [vmem:[#allocation2] sm:$0x3] %v844_v40 }
 0x1d8   :  { %857 = dma.vmem_to_hbm [thread:$0]  %s853_s13, 32, %s855_s16, [#allocation3]  }
 0x1d9   :  { %1102 = dma.done.wait [#allocation3], 32  }
 0x1da   :  { %1103 = vsyncadd [#allocation3], 4294967264 }
 0x1db   :  { %862 = vsyncpa [#allocation3], 1 }

</bundles_post_ra>
